<compile_context>
chip_gen: v6e
topology: v6e:2x2x1
jax: 0.10.0
libtpu: 0.0.40
codegen_flags: <defaults>
</compile_context>

<pallas_src>
import functools

import jax
import jax.numpy as jnp
from jax.experimental import pallas as pl
from jax.experimental.pallas import tpu as pltpu

IN_SIZE = 10
HIDDEN = 100
HIDDEN_PAD = 128          # lane-padded hidden width
OUT_SIZE = 21             # final logits are (batch, OUT_SIZE, 3)
OUT_FLAT = OUT_SIZE * 3   # 63
OUT_PAD = 128             # lane-padded fc6 width (matmul only; store is 63)
BN_EPS = 1e-5
LEAKY_SLOPE = 0.01        # nn.LeakyReLU default negative_slope
MAX_TILE_B = 4096         # batch rows per block (fast-path limit / tile size)
N_STAT_CHUNKS = 2         # parallel chunks for the stats pass (v7x: 2 TCs)
VMEM_LIMIT = 48 * 1024 * 1024


def _round_up(n, m):
    return ((n + m - 1) // m) * m


def _cdiv(a, b):
    return -(-a // b)


# --------------------------------------------------------------------------
# Fast path: whole (row-padded) batch in one block, grid=(1,).
# --------------------------------------------------------------------------
def _fused_kernel(x_ref, w1_ref, gamma_ref, beta_ref, w2_ref, b2_ref, o_ref,
                  *, n_rows, n_pad_rows):
    # fc1 on the MXU: bf16 operands (cast in-kernel), f32 accumulation.
    # Zero-padded batch rows produce exactly-zero rows of g.
    g = jnp.dot(x_ref[...].astype(jnp.bfloat16), w1_ref[...],
                preferred_element_type=jnp.float32)            # (n_pad, 128)

    inv_n = 1.0 / n_rows
    mean = jnp.sum(g, axis=0, keepdims=True) * inv_n           # (1, 128)
    d = g - mean
    # Each padded row contributes (0 - mean)^2 to the centered sum of squares;
    # subtract that analytically instead of masking.
    ssq = jnp.sum(d * d, axis=0, keepdims=True) \
        - float(n_pad_rows) * (mean * mean)
    var = jnp.maximum(ssq * inv_n, 0.0)                        # biased var

    scale = gamma_ref[...] * jax.lax.rsqrt(var + BN_EPS)       # EUP rsqrt
    y = d * scale + beta_ref[...]                              # BN (b1 cancels)
    y = jnp.maximum(y, LEAKY_SLOPE * y)                        # LeakyReLU

    out = jnp.dot(y.astype(jnp.bfloat16), w2_ref[...],
                  preferred_element_type=jnp.float32) + b2_ref[...]
    o_ref[...] = out[:, :OUT_FLAT].astype(o_ref.dtype)         # 63-col store


# --------------------------------------------------------------------------
# Tiled pass 1: per-chunk partial moments of g = x @ w1.
# Grid (chunk "parallel", tile "arbitrary"); padded rows are exact zeros.
# --------------------------------------------------------------------------
def _stats_kernel(x_ref, w1_ref, sum_ref, sq_ref):
    @pl.when(pl.program_id(1) == 0)
    def _():
        sum_ref[...] = jnp.zeros_like(sum_ref)
        sq_ref[...] = jnp.zeros_like(sq_ref)

    g = jnp.dot(x_ref[...].astype(jnp.bfloat16), w1_ref[...],
                preferred_element_type=jnp.float32)            # (tb, 128)
    sum_ref[...] += jnp.sum(g, axis=0, keepdims=True)[None]    # (1, 1, 128)
    sq_ref[...] += jnp.sum(g * g, axis=0, keepdims=True)[None]


# --------------------------------------------------------------------------
# Tiled pass 2: fc1 -> affine BN (precomputed scale/shift) -> LeakyReLU -> fc6.
# --------------------------------------------------------------------------
def _fwd_kernel(x_ref, w1_ref, scale_ref, shift_ref, w2_ref, b2_ref, o_ref):
    g = jnp.dot(x_ref[...].astype(jnp.bfloat16), w1_ref[...],
                preferred_element_type=jnp.float32)            # (tb, 128)
    h = g * scale_ref[...] + shift_ref[...]                    # fused BN
    h = jnp.maximum(h, LEAKY_SLOPE * h)                        # LeakyReLU
    out = jnp.dot(h.astype(jnp.bfloat16), w2_ref[...],
                  preferred_element_type=jnp.float32) + b2_ref[...]
    o_ref[...] = out[:, :OUT_FLAT].astype(o_ref.dtype)         # 63-col store


# --------------------------------------------------------------------------
# Wrapper
# --------------------------------------------------------------------------
def _pad2(a, rows, cols, dtype=jnp.float32):
    r, c = a.shape
    return jnp.pad(a, ((0, rows - r), (0, cols - c))).astype(dtype)


def _prepare_params(params):
    """Zero-pad feature dims to 128 lanes; matmul weights in bf16."""
    w1, b1, gamma, beta, w2, b2 = params
    del b1  # exactly cancelled by training-mode (batch-stat) BatchNorm
    return (
        _pad2(w1, IN_SIZE, HIDDEN_PAD, jnp.bfloat16),
        _pad2(gamma, 1, HIDDEN_PAD),
        _pad2(beta, 1, HIDDEN_PAD),
        _pad2(w2, HIDDEN_PAD, OUT_PAD, jnp.bfloat16),
        _pad2(b2, 1, OUT_PAD),
    )


def fully_connected_forward(x, params, *, block_rows=MAX_TILE_B):
    """x: (B, IN_SIZE) float32. Returns the torch module's output tuple."""
    batch = x.shape[0]
    w1p, gp, bp, w2p, b2p = _prepare_params(params)
    x = x.astype(jnp.float32)

    if batch <= block_rows:
        # ---- single fused call (covers small / medium batches) ----
        n_pad = _round_up(batch, 8)
        xp = x if n_pad == batch else jnp.pad(x, ((0, n_pad - batch), (0, 0)))
        full = lambda shape: pl.BlockSpec(shape, lambda i: (0, 0))
        out_flat = pl.pallas_call(
            functools.partial(_fused_kernel, n_rows=batch,
                              n_pad_rows=n_pad - batch),
            out_shape=jax.ShapeDtypeStruct((n_pad, OUT_FLAT), jnp.float32),
            grid=(1,),
            in_specs=[full((n_pad, IN_SIZE)),
                      full((IN_SIZE, HIDDEN_PAD)),
                      full((1, HIDDEN_PAD)),
                      full((1, HIDDEN_PAD)),
                      full((HIDDEN_PAD, OUT_PAD)),
                      full((1, OUT_PAD))],
            out_specs=full((n_pad, OUT_FLAT)),
            compiler_params=pltpu.CompilerParams(
                dimension_semantics=("arbitrary",),
                vmem_limit_bytes=VMEM_LIMIT),
        )(xp, w1p, gp, bp, w2p, b2p)
        out_flat = out_flat if n_pad == batch else out_flat[:batch]
        out = out_flat.reshape(batch, OUT_SIZE, 3)
        return (None, (None, None), None, (None, None), out)

    # ---- two-pass tiled path (large batch) ----
    n_tiles = _cdiv(batch, block_rows)
    if n_tiles % N_STAT_CHUNKS:                 # even tile count (v7x megacore)
        n_tiles += N_STAT_CHUNKS - n_tiles % N_STAT_CHUNKS
    tb = _round_up(_cdiv(batch, n_tiles), 16)   # bf16 sublane packing
    b_pad = n_tiles * tb
    tiles_per_chunk = n_tiles // N_STAT_CHUNKS
    xp = x if b_pad == batch else jnp.pad(x, ((0, b_pad - batch), (0, 0)))

    # Pass 1: chunked partial sum / sum-of-squares of g = x @ w1.
    sums, sqs = pl.pallas_call(
        _stats_kernel,
        out_shape=(
            jax.ShapeDtypeStruct((N_STAT_CHUNKS, 1, HIDDEN_PAD), jnp.float32),
            jax.ShapeDtypeStruct((N_STAT_CHUNKS, 1, HIDDEN_PAD), jnp.float32)),
        grid=(N_STAT_CHUNKS, tiles_per_chunk),
        in_specs=[pl.BlockSpec((tb, IN_SIZE),
                               lambda c, t: (c * tiles_per_chunk + t, 0)),
                  pl.BlockSpec((IN_SIZE, HIDDEN_PAD), lambda c, t: (0, 0))],
        out_specs=(pl.BlockSpec((1, 1, HIDDEN_PAD), lambda c, t: (c, 0, 0)),
                   pl.BlockSpec((1, 1, HIDDEN_PAD), lambda c, t: (c, 0, 0))),
        compiler_params=pltpu.CompilerParams(
            dimension_semantics=("parallel", "arbitrary"),
            vmem_limit_bytes=VMEM_LIMIT),
    )(xp, w1p)

    # Finalize BN into a fused scale/shift (tiny (1,128) ops; fc1 bias is
    # absorbed: shift = beta - mean(x@w1) * scale).
    sum_g = jnp.sum(sums, axis=0)                       # (1, 128)
    sq_g = jnp.sum(sqs, axis=0)
    mean_g = sum_g / batch
    var_g = jnp.maximum(sq_g / batch - mean_g * mean_g, 0.0)   # biased var
    scale = gp * jax.lax.rsqrt(var_g + BN_EPS)
    shift = bp - mean_g * scale

    # Pass 2: fused forward, parallel over row tiles; weights stay resident.
    out_flat = pl.pallas_call(
        _fwd_kernel,
        out_shape=jax.ShapeDtypeStruct((b_pad, OUT_FLAT), jnp.float32),
        grid=(n_tiles,),
        in_specs=[pl.BlockSpec((tb, IN_SIZE), lambda i: (i, 0)),
                  pl.BlockSpec((IN_SIZE, HIDDEN_PAD), lambda i: (0, 0)),
                  pl.BlockSpec((1, HIDDEN_PAD), lambda i: (0, 0)),
                  pl.BlockSpec((1, HIDDEN_PAD), lambda i: (0, 0)),
                  pl.BlockSpec((HIDDEN_PAD, OUT_PAD), lambda i: (0, 0)),
                  pl.BlockSpec((1, OUT_PAD), lambda i: (0, 0))],
        out_specs=pl.BlockSpec((tb, OUT_FLAT), lambda i: (i, 0)),
        compiler_params=pltpu.CompilerParams(
            dimension_semantics=("parallel",),
            vmem_limit_bytes=VMEM_LIMIT),
    )(xp, w1p, scale, shift, w2p, b2p)

    out_flat = out_flat if b_pad == batch else out_flat[:batch]
    out = out_flat.reshape(batch, OUT_SIZE, 3)
    return (None, (None, None), None, (None, None), out)


def init_params(key):
    """Deterministic init; shapes mirror the torch module (W stored in x out)."""
    k1, k2, k3, k4 = jax.random.split(key, 4)
    lim1 = 1.0 / (IN_SIZE ** 0.5)
    lim2 = 1.0 / (HIDDEN ** 0.5)
    w1 = jax.random.uniform(k1, (IN_SIZE, HIDDEN), jnp.float32, -lim1, lim1)
    b1 = jax.random.uniform(k2, (1, HIDDEN), jnp.float32, -lim1, lim1)
    gamma = jnp.ones((1, HIDDEN), jnp.float32)   # BatchNorm1d weight init
    beta = jnp.zeros((1, HIDDEN), jnp.float32)   # BatchNorm1d bias init
    w2 = jax.random.uniform(k3, (HIDDEN, OUT_FLAT), jnp.float32, -lim2, lim2)
    b2 = jax.random.uniform(k4, (1, OUT_FLAT), jnp.float32, -lim2, lim2)
    return (w1, b1, gamma, beta, w2, b2)


def _reference(x, params):
    """Pure-JAX reference with matching bf16 matmul-operand rounding."""
    w1, b1, gamma, beta, w2, b2 = params
    bf = lambda a: a.astype(jnp.bfloat16).astype(jnp.float32)
    h = bf(x) @ bf(w1) + b1
    mean = h.mean(0, keepdims=True)
    var = ((h - mean) ** 2).mean(0, keepdims=True)        # biased variance
    h = (h - mean) * jax.lax.rsqrt(var + BN_EPS) * gamma + beta
    h = jnp.maximum(h, LEAKY_SLOPE * h)
    out = bf(h) @ bf(w2) + b2
    return out.reshape(x.shape[0], OUT_SIZE, 3)


if __name__ == "__main__":
    key = jax.random.PRNGKey(0)
    kx, kp, kx2 = jax.random.split(key, 3)
    params = init_params(kp)

    # Small batch -> fused single-call fast path (non-multiple-of-8 rows).
    batch = 6
    x = jax.random.normal(kx, (batch, IN_SIZE), jnp.float32)
    out = fully_connected_forward(x, params)[4]
    jax.block_until_ready(out)
    assert out.shape == (batch, OUT_SIZE, 3), out.shape
    ref = _reference(x, params)
    assert jnp.allclose(out, ref, atol=3e-3, rtol=3e-3), (
        float(jnp.max(jnp.abs(out - ref))))

    # Larger batch with a small block_rows override -> exercises the tiled
    # two-pass path (chunked parallel stats, even tile count, padded rows).
    batch2 = 300
    x2 = jax.random.normal(kx2, (batch2, IN_SIZE), jnp.float32)
    out2 = fully_connected_forward(x2, params, block_rows=128)[4]
    jax.block_until_ready(out2)
    assert out2.shape == (batch2, OUT_SIZE, 3), out2.shape
    ref2 = _reference(x2, params)
    assert jnp.allclose(out2, ref2, atol=3e-3, rtol=3e-3), (
        float(jnp.max(jnp.abs(out2 - ref2))))

    # Same batch through the default fast path (single fused call).
    out3 = fully_connected_forward(x2, params)[4]
    jax.block_until_ready(out3)
    assert jnp.allclose(out3, ref2, atol=3e-3, rtol=3e-3), (
        float(jnp.max(jnp.abs(out3 - ref2))))

    print("KERNEL_OK")
</pallas_src>

<mosaic_0001>
module attributes {stable_mosaic.version = 11 : i64} {
  func.func @_fused_kernel(%arg0: i32, %arg1: memref<8x10xf32, #tpu.memory_space<vmem>>, %arg2: memref<10x128xbf16, #tpu.memory_space<vmem>>, %arg3: memref<1x128xf32, #tpu.memory_space<vmem>>, %arg4: memref<1x128xf32, #tpu.memory_space<vmem>>, %arg5: memref<128x128xbf16, #tpu.memory_space<vmem>>, %arg6: memref<1x128xf32, #tpu.memory_space<vmem>>, %arg7: memref<8x63xf32, #tpu.memory_space<vmem>>) attributes {dimension_semantics = [#tpu.dimension_semantics<arbitrary>], iteration_bounds = array<i64: 1>, scalar_prefetch = 0 : i64, scratch_operands = 0 : i64, tpu.core_type = #tpu.core_type<tc>, window_params = [{pipeline_mode = #tpu.pipeline_mode<synchronous>, transform_indices = @transform_0, window_bounds = array<i64: 8, 10>}, {pipeline_mode = #tpu.pipeline_mode<synchronous>, transform_indices = @transform_1, window_bounds = array<i64: 10, 128>}, {pipeline_mode = #tpu.pipeline_mode<synchronous>, transform_indices = @transform_2, window_bounds = array<i64: 1, 128>}, {pipeline_mode = #tpu.pipeline_mode<synchronous>, transform_indices = @transform_3, window_bounds = array<i64: 1, 128>}, {pipeline_mode = #tpu.pipeline_mode<synchronous>, transform_indices = @transform_4, window_bounds = array<i64: 128, 128>}, {pipeline_mode = #tpu.pipeline_mode<synchronous>, transform_indices = @transform_5, window_bounds = array<i64: 1, 128>}, {pipeline_mode = #tpu.pipeline_mode<synchronous>, transform_indices = @transform_6, window_bounds = array<i64: 8, 63>}]} {
    %c0 = arith.constant 0 : index
    %c0_0 = arith.constant 0 : index
    %0 = vector.load %arg1[%c0, %c0_0] : memref<8x10xf32, #tpu.memory_space<vmem>>, vector<8x10xf32>
    %1 = arith.truncf %0 : vector<8x10xf32> to vector<8x10xbf16>
    %c0_1 = arith.constant 0 : index
    %c0_2 = arith.constant 0 : index
    %2 = vector.load %arg2[%c0_1, %c0_2] : memref<10x128xbf16, #tpu.memory_space<vmem>>, vector<10x128xbf16>
    %cst = arith.constant dense<0.000000e+00> : vector<8x128xf32>
    %3 = tpu.matmul %1, %2, %cst {dimension_numbers = #tpu.dot_dimension_numbers<[1], [0], [0], [1], [0, 0, 1, 1], [], []>} : vector<8x10xbf16>, vector<10x128xbf16>, vector<8x128xf32> -> vector<8x128xf32>
    %cst_3 = arith.constant dense<0.000000e+00> : vector<128xf32>
    %4 = vector.multi_reduction <add>, %3, %cst_3 [0] : vector<8x128xf32> to vector<128xf32>
    %5 = vector.shape_cast %4 : vector<128xf32> to vector<1x128xf32>
    %cst_4 = arith.constant 0.166666672 : f32
    %6 = vector.broadcast %cst_4 : f32 to vector<1x128xf32>
    %7 = arith.mulf %5, %6 : vector<1x128xf32>
    %8 = vector.broadcast %7 : vector<1x128xf32> to vector<8x128xf32>
    %9 = arith.subf %3, %8 : vector<8x128xf32>
    %10 = arith.mulf %9, %9 : vector<8x128xf32>
    %cst_5 = arith.constant dense<0.000000e+00> : vector<128xf32>
    %11 = vector.multi_reduction <add>, %10, %cst_5 [0] : vector<8x128xf32> to vector<128xf32>
    %12 = vector.shape_cast %11 : vector<128xf32> to vector<1x128xf32>
    %13 = arith.mulf %7, %7 : vector<1x128xf32>
    %cst_6 = arith.constant 2.000000e+00 : f32
    %14 = vector.broadcast %cst_6 : f32 to vector<1x128xf32>
    %15 = arith.mulf %14, %13 : vector<1x128xf32>
    %16 = arith.subf %12, %15 : vector<1x128xf32>
    %cst_7 = arith.constant 0.166666672 : f32
    %17 = vector.broadcast %cst_7 : f32 to vector<1x128xf32>
    %18 = arith.mulf %16, %17 : vector<1x128xf32>
    %cst_8 = arith.constant 0.000000e+00 : f32
    %19 = vector.broadcast %cst_8 : f32 to vector<1x128xf32>
    %20 = arith.maximumf %18, %19 : vector<1x128xf32>
    %c0_9 = arith.constant 0 : index
    %c0_10 = arith.constant 0 : index
    %21 = vector.load %arg3[%c0_9, %c0_10] : memref<1x128xf32, #tpu.memory_space<vmem>>, vector<1x128xf32>
    %cst_11 = arith.constant 9.99999974E-6 : f32
    %22 = vector.broadcast %cst_11 : f32 to vector<1x128xf32>
    %23 = arith.addf %20, %22 : vector<1x128xf32>
    %24 = math.rsqrt %23 : vector<1x128xf32>
    %25 = arith.mulf %21, %24 : vector<1x128xf32>
    %26 = vector.broadcast %25 : vector<1x128xf32> to vector<8x128xf32>
    %27 = arith.mulf %9, %26 : vector<8x128xf32>
    %c0_12 = arith.constant 0 : index
    %c0_13 = arith.constant 0 : index
    %28 = vector.load %arg4[%c0_12, %c0_13] : memref<1x128xf32, #tpu.memory_space<vmem>>, vector<1x128xf32>
    %29 = vector.broadcast %28 : vector<1x128xf32> to vector<8x128xf32>
    %30 = arith.addf %27, %29 : vector<8x128xf32>
    %cst_14 = arith.constant 0.00999999977 : f32
    %31 = vector.broadcast %cst_14 : f32 to vector<8x128xf32>
    %32 = arith.mulf %31, %30 : vector<8x128xf32>
    %33 = arith.maximumf %30, %32 : vector<8x128xf32>
    %34 = arith.truncf %33 : vector<8x128xf32> to vector<8x128xbf16>
    %c0_15 = arith.constant 0 : index
    %c0_16 = arith.constant 0 : index
    %35 = vector.load %arg5[%c0_15, %c0_16] : memref<128x128xbf16, #tpu.memory_space<vmem>>, vector<128x128xbf16>
    %cst_17 = arith.constant dense<0.000000e+00> : vector<8x128xf32>
    %36 = tpu.matmul %34, %35, %cst_17 {dimension_numbers = #tpu.dot_dimension_numbers<[1], [0], [0], [1], [0, 0, 1, 1], [], []>} : vector<8x128xbf16>, vector<128x128xbf16>, vector<8x128xf32> -> vector<8x128xf32>
    %c0_18 = arith.constant 0 : index
    %c0_19 = arith.constant 0 : index
    %37 = vector.load %arg6[%c0_18, %c0_19] : memref<1x128xf32, #tpu.memory_space<vmem>>, vector<1x128xf32>
    %38 = vector.broadcast %37 : vector<1x128xf32> to vector<8x128xf32>
    %39 = arith.addf %36, %38 : vector<8x128xf32>
    %40 = vector.extract_strided_slice %39 {offsets = [0, 0], sizes = [8, 63], strides = [1, 1]} : vector<8x128xf32> to vector<8x63xf32>
    %c0_20 = arith.constant 0 : index
    %c0_21 = arith.constant 0 : index
    %41 = vector.load %arg7[%c0_20, %c0_21] : memref<8x63xf32, #tpu.memory_space<vmem>>, vector<8x63xf32>
    tpu.vector_store %arg7[%c0_20, %c0_21], %40 {strides = array<i32>} : memref<8x63xf32, #tpu.memory_space<vmem>>, vector<8x63xf32>,
    return
  }
  func.func @transform_0(%arg0: i32) -> (i32, i32) {
    %c0_i32 = arith.constant 0 : i32
    %c0_i32_0 = arith.constant 0 : i32
    %c0_i32_1 = arith.constant 0 : i32
    return %c0_i32, %c0_i32_0 : i32, i32
  }
  func.func @transform_1(%arg0: i32) -> (i32, i32) {
    %c0_i32 = arith.constant 0 : i32
    %c0_i32_0 = arith.constant 0 : i32
    %c0_i32_1 = arith.constant 0 : i32
    return %c0_i32, %c0_i32_0 : i32, i32
  }
  func.func @transform_2(%arg0: i32) -> (i32, i32) {
    %c0_i32 = arith.constant 0 : i32
    %c0_i32_0 = arith.constant 0 : i32
    %c0_i32_1 = arith.constant 0 : i32
    return %c0_i32, %c0_i32_0 : i32, i32
  }
  func.func @transform_3(%arg0: i32) -> (i32, i32) {
    %c0_i32 = arith.constant 0 : i32
    %c0_i32_0 = arith.constant 0 : i32
    %c0_i32_1 = arith.constant 0 : i32
    return %c0_i32, %c0_i32_0 : i32, i32
  }
  func.func @transform_4(%arg0: i32) -> (i32, i32) {
    %c0_i32 = arith.constant 0 : i32
    %c0_i32_0 = arith.constant 0 : i32
    %c0_i32_1 = arith.constant 0 : i32
    return %c0_i32, %c0_i32_0 : i32, i32
  }
  func.func @transform_5(%arg0: i32) -> (i32, i32) {
    %c0_i32 = arith.constant 0 : i32
    %c0_i32_0 = arith.constant 0 : i32
    %c0_i32_1 = arith.constant 0 : i32
    return %c0_i32, %c0_i32_0 : i32, i32
  }
  func.func @transform_6(%arg0: i32) -> (i32, i32) {
    %c0_i32 = arith.constant 0 : i32
    %c0_i32_0 = arith.constant 0 : i32
    %c0_i32_1 = arith.constant 0 : i32
    return %c0_i32, %c0_i32_0 : i32, i32
  }
}

</mosaic_0001>

<bundles_post_ra>
// kernel: tpu_custom_call.1
= control target key start
LH: loop header
LB: loop body
LE: loop exit
PB: predicated region body
PF: predicated region fallthrough
CT: control target
= control target key end

     0   :  { %11 = vsyncpa [#allocation3], 0  ;;  %s510_s0 = inlined_call_operand.hbm [shape: f32[8,10], index: 0, kind: input, shape index: {}]   ;;  %s511_s1 = inlined_call_operand.hbm [shape: bf16[10,128], index: 1, kind: input, shape index: {}]   ;;  %s512_s2 = inlined_call_operand.vmem [shape: f32[1,128], index: 2, kind: input, shape index: {}]   ;;  %s513_s3 = inlined_call_operand.vmem [shape: f32[1,128], index: 3, kind: input, shape index: {}]   ;;  %s514_s4 = inlined_call_operand.hbm [shape: bf16[128,128], index: 4, kind: input, shape index: {}]   ;;  %s515_s5 = inlined_call_operand.vmem [shape: f32[1,128], index: 5, kind: input, shape index: {}]   ;;  %s516_s6 = inlined_call_operand.hbm [shape: f32[8,63], index: 6, kind: output, shape index: {}]  }
   0x1   :  { %12 = vsyncpa [#allocation6], 0 }
   0x2   :  { %13 = vsyncpa [#allocation4], 0  ;;  %s446_s21 = smov [#allocation5]  }
   0x3   :  { %s29_s22 = sshll.u32 %s446_s21, 4  ;;  %s30_s22 = int_to_ptr.vmem [resolvable:$true] %s29_s22 }
   0x4   :  { %s368_s23 = scalar_lea.vmem %s30_s22, 128  ;;  %p373_p1 = scmp.lt.s32.totalorder %s30_s22, %s30_s22 }
   0x5   :  { %p369_p0 = scmp.ne.s32.totalorder %s30_s22, %s368_s23  ;;  %p374_p2 = scmp.lt.s32.totalorder %s368_s23, %s368_s23 }
   0x7   :  { %p375_p3 = por %p374_p2, %p373_p1 }
   0x9   :  { %p376_p4 = pnand %p375_p3, %p369_p0 }
   0xb   :  { %379 = shalt.err (!%p376_p4)
}
   0xc   :  { %s447_s24 = smov 64   ;;  %s448_s25 = smov 4  }
   0xd   :  { %35 = dma.hbm_to_vmem [thread:$0]  %s511_s1, 128, %s30_s22, [#allocation6], %s447_s24, %s447_s24, %s448_s25  }
   0xe   :  { %s449_s28 = smov [#allocation2]   ;;  %s450_s30 = smov [#allocation7]  }
   0xf   :  { %s20_s29 = sshll.u32 %s449_s28, 4  ;;  %s45_s7 = sshll.u32 %s450_s30, 4  ;;  %s21_s29 = int_to_ptr.vmem [resolvable:$true] %s20_s29  ;;  %s46_s7 = int_to_ptr.vmem [resolvable:$true] %s45_s7 }
  0x10   :  { %s388_s8 = scalar_lea.vmem %s21_s29, 128  ;;  %p393_p6 = scmp.lt.s32.totalorder %s21_s29, %s21_s29 }
  0x11   :  { %p389_p5 = scmp.ne.s32.totalorder %s21_s29, %s388_s8  ;;  %p394_p7 = scmp.lt.s32.totalorder %s388_s8, %s388_s8 }
  0x13   :  { %p395_p8 = por %p394_p7, %p393_p6 }
  0x15   :  { %p396_p9 = pnand %p395_p8, %p389_p5 }
  0x17   :  { %399 = shalt.err (!%p396_p9)
}
  0x18   :  { %23 = dma.hbm_to_vmem [thread:$0]  %s510_s0, 128, %s21_s29, [#allocation3]  }
  0x19   :  { %s408_s11 = scalar_lea.vmem %s46_s7, 1024  ;;  %p413_p11 = scmp.lt.s32.totalorder %s46_s7, %s46_s7 }
  0x1a   :  { %p409_p10 = scmp.ne.s32.totalorder %s46_s7, %s408_s11  ;;  %p414_p12 = scmp.lt.s32.totalorder %s408_s11, %s408_s11 }
  0x1c   :  { %p415_p13 = por %p414_p12, %p413_p11 }
  0x1e   :  { %p416_p0 = pnand %p415_p13, %p409_p10 }
  0x20   :  { %419 = shalt.err (!%p416_p0)
}
  0x21   :  { %51 = dma.hbm_to_vmem [thread:$0]  %s514_s4, 1024, %s46_s7, [#allocation6], %s447_s24, %s447_s24, %s448_s25  }
  0x22   :  { %440 = dma.done.wait [#allocation3], 128  }
  0x23   :  { %441 = vsyncadd [#allocation3], 4294967168 }
  0x24   :  { %442 = dma.done.wait [#allocation6], 1152  }
  0x25   :  { %443 = vsyncadd [#allocation6], 4294966144  ;;  %v451_v0 = vmov 0.0   ;;  %vm452_vm0 = vmmov 0   ;;  %vm77_vm1 = vcmask 1044480   ;;  %v64_v2 = vld [vmem:[#allocation2] sm:$0xff]  ;;  %v146_v38 = vlaneseq }
  0x26   :  { %315 = vmatprep.subr.bf16.mxu0 %v451_v0  ;;  %317 = vmatprep.mubr.msk.bf16.mxu0 %vm452_vm0, %v451_v0  ;;  %v349_v1 = vld [vmem:[#allocation5] sm:$0x1f]   ;;  %v65_v4 = vpack.c.bf16 %v64_v2, %v64_v2  ;;  %vm73_vm2 = vcmask 80896   ;;  %v351_v6 = vld [vmem:[#allocation7 + $0x30] sm:$0xff]   ;;  %v352_v7 = vld [vmem:[#allocation7 + $0x28] sm:$0xff]   ;;  %s453_s17 = smov [#allocation8]  }
  0x27   :  { %321 = vmatprep.subr.bf16.mxu1 %v451_v0  ;;  %337 = vmatprep.mubr.msk.bf16.mxu1 %vm452_vm0, %v451_v0  ;;  %v79_v3 = vsel %vm77_vm1, %v349_v1, 0  ;;  %v350_v5 = vld [vmem:[#allocation7 + $0x38] sm:$0xff]   ;;  %v353_v8 = vld [vmem:[#allocation7 + $0x20] sm:$0xff]   ;;  %v355_v10 = vld [vmem:[#allocation7 + $0x10] sm:$0xff]   ;;  %v147_v39 = vshrl.u32 %v146_v38, 7  ;;  %vm274_vm3 = vcmask 515072  }
  0x28   :  { %316 = vmatpush3.bf16.msra.mxu0 %v79_v3  ;;  %322 = vmatpush3.bf16.msra.mxu1 %v350_v5  ;;  %v354_v9 = vld [vmem:[#allocation7 + $0x18] sm:$0xff]   ;;  %v356_v11 = vld [vmem:[#allocation7 + $0x8] sm:$0xff]   ;;  %v357_v12 = vld [vmem:[#allocation7] sm:$0xff]  }
  0x29   :  { %323 = vmatprep.subr.bf16.mxu1 %v451_v0  ;;  %v141_v40 = vld [vmem:[%s512_s2] sm:$0x1]  ;;  %v148_v41 = vsub.s32 0, %v147_v39  ;;  %s282_s2 = sshll.u32 %s453_s17, 4  ;;  %s283_s2 = int_to_ptr.vmem [resolvable:$true] %s282_s2 }
  0x2a   :  { %v294_v45 = vld [vmem:[%s513_s3] ss:$0 sm:$0xff]  ;;  %s420_s3 = scalar_lea.vmem %s283_s2, 128  ;;  %p425_p2 = scmp.lt.s32.totalorder %s283_s2, %s283_s2 }
  0x2b   :  { %318 = vmatmul.mubr.msk.bf16.vlgmr.msra.gmra.mxu0 %vm73_vm2, %v65_v4  ;;  %v295_v51 = vld [vmem:[%s515_s5] ss:$0 sm:$0xff]  ;;  %p421_p1 = scmp.ne.s32.totalorder %s283_s2, %s420_s3  ;;  %p426_p3 = scmp.lt.s32.totalorder %s420_s3, %s420_s3 }
  0x2c   :  { %324 = vmatpush3.bf16.msra.mxu1 %v351_v6 }
  0x2d   :  { %325 = vmatprep.subr.bf16.mxu1 %v451_v0  ;;  %p427_p4 = por %p426_p3, %p425_p2 }
  0x2f   :  { %p428_p5 = pnand %p427_p4, %p421_p1 }
  0x30   :  { %326 = vmatpush3.bf16.msra.mxu1 %v352_v7 }
  0x31   :  { %327 = vmatprep.subr.bf16.mxu1 %v451_v0 }
  0x34   :  { %328 = vmatpush3.bf16.msra.mxu1 %v353_v8 }
  0x35   :  { %329 = vmatprep.subr.bf16.mxu1 %v451_v0 }
  0x38   :  { %330 = vmatpush3.bf16.msra.mxu1 %v354_v9 }
  0x39   :  { %331 = vmatprep.subr.bf16.mxu1 %v451_v0 }
  0x3c   :  { %332 = vmatpush3.bf16.msra.mxu1 %v355_v10 }
  0x3d   :  { %333 = vmatprep.subr.bf16.mxu1 %v451_v0 }
  0x40   :  { %334 = vmatpush3.bf16.msra.mxu1 %v356_v11 }
  0x41   :  { %335 = vmatprep.subr.bf16.mxu1 %v451_v0 }
  0x44   :  { %336 = vmatpush3.bf16.msra.mxu1 %v357_v12 }
  0xeb   :  { %v115_v13 = vpop.f32.mrf.mxu0 }
  0xec   :  { %v121_v14 = vrot.slane %v115_v13, 4 }
  0xed   :  { %v319_v15 = vpop.f32.mrf.mxu0 }
  0xee   :  { %v122_v16 = vadd.f32 %v121_v14, %v115_v13 }
  0xef   :  { %v118_v17 = vpop.f32.mrf.mxu0 }
  0xf0   :  { %v123_v18 = vrot.slane %v122_v16, 2 }
  0xf1   :  { %v320_v19 = vpop.f32.mrf.mxu0 }
  0xf2   :  { %v124_v20 = vadd.f32 %v123_v18, %v122_v16 }
  0xf4   :  { %v125_v21 = vrot.slane %v124_v20, 1 }
  0xf6   :  { %v126_v22 = vadd.f32 %v125_v21, %v124_v20 }
  0xf8   :  { %v127_v23 = vmul.f32 0.16666667, %v126_v22 }
  0xfa   :  { %v128_v24 = vsub.f32 %v115_v13, %v127_v23  ;;  %v136_v30 = vmul.f32 %v127_v23, %v127_v23 }
  0xfc   :  { %v129_v25 = vmul.f32 %v128_v24, %v128_v24  ;;  %v137_v33 = vmul.f32 2.0, %v136_v30 }
  0xfe   :  { %v130_v26 = vrot.slane %v129_v25, 4 }
 0x100   :  { %v131_v27 = vadd.f32 %v130_v26, %v129_v25 }
 0x102   :  { %v132_v28 = vrot.slane %v131_v27, 2 }
 0x104   :  { %v133_v29 = vadd.f32 %v132_v28, %v131_v27 }
 0x106   :  { %v134_v31 = vrot.slane %v133_v29, 1 }
 0x108   :  { %v135_v32 = vadd.f32 %v134_v31, %v133_v29 }
 0x10a   :  { %v138_v34 = vsub.f32 %v135_v32, %v137_v33 }
 0x10c   :  { %v139_v35 = vmul.f32 0.16666667, %v138_v34 }
 0x10e   :  { %v140_v36 = vmax.f32 %v139_v35, 0.0 }
 0x110   :  { %v142_v37 = vadd.f32 1e-05, %v140_v36 }
 0x112   :  { %358 = vrsqrt.f32 %v142_v37 }
 0x11f   :  { %v359_v42 = vpop.eup %358 }
 0x120   :  { %v144_v43 = vmul.f32 %v359_v42, %v141_v40 }
 0x122   :  { %v149_v44 = vrot.slane %v144_v43, %v148_v41 }
 0x124   :  { %v151_v46 = vmul.f32 %v149_v44, %v128_v24 }
 0x126   :  { %v159_v47 = vadd.f32 %v294_v45, %v151_v46 }
 0x128   :  { %v160_v48 = vmul.f32 0.01, %v159_v47 }
 0x12a   :  { %v161_v49 = vmax.f32 %v159_v47, %v160_v48 }
 0x12c   :  { %v162_v50 = vpack.c.bf16 %v161_v49, %v161_v49 }
 0x12e   :  { %338 = vmatmul.mubr.bf16.vlgmr.msra.gmra.mxu1 %v162_v50 }
 0x1ee   :  { %v268_v52 = vpop.f32.mrf.mxu1 }
 0x1ef   :  { %v269_v53 = vadd.f32 %v295_v51, %v268_v52 }
 0x1f0   :  { %v339_v54 = vpop.f32.mrf.mxu1 }
 0x1f1   :  { %275 = vst.msk [vmem:[#allocation8] sm:$0xff] %vm274_vm3, %v269_v53 }
 0x1f2   :  { %v271_v55 = vpop.f32.mrf.mxu1 }
 0x1f3   :  { %431 = shalt.err (!%p428_p5)
}
 0x1f4   :  { %285 = dma.vmem_to_hbm [thread:$0]  %s283_s2, 128, %s516_s6, [#allocation4]   ;;  %v340_v56 = vpop.f32.mrf.mxu1 }
 0x1f5   :  { %444 = dma.done.wait [#allocation4], 128  }
 0x1f6   :  { %445 = vsyncadd [#allocation4], 4294967168 }
 0x1f7   :  { %289 = vsyncpa [#allocation3], 1 }
 0x1f8   :  { %290 = vsyncpa [#allocation6], 1 }
 0x1f9   :  { %291 = vsyncpa [#allocation4], 1 }

</bundles_post_ra>
